<compile_context>
chip_gen: v7x
topology: tpu7x:2x2x1
jax: 0.10.0
libtpu: 0.0.40
codegen_flags: <defaults>
</compile_context>

<pallas_src>
import jax
import jax.numpy as jnp
from jax.experimental import pallas as pl
from jax.experimental.pallas import tpu as pltpu


N_CLASSES = 2      # GCNConv(16, 2)
F_HID = 16         # GCNConv(1, 16)
F_PAD = 128        # lane-dense padded class dimension


def gcn_kernel(a_ref, x_ref, w1_ref, b1_ref, w2_ref, b2_ref, o_ref):
    # Per-graph block shapes (leading graph dim squeezed away):
    #   a_ref  [N, N]     A + I (dense f32)
    #   x_ref  [N, 1]     node features (F_in == 1)
    #   w1_ref [1, 16]    conv1 weight (row vector since F_in == 1)
    #   b1_ref [1, 16]    conv1 bias
    #   w2_ref [16, 128]  conv2 weight, zero-padded 2 -> 128 classes
    #   b2_ref [1, 128]   conv2 bias,   zero-padded
    #   o_ref  [N, 128]   log-softmax logits (first 2 lanes meaningful)
    a_hat = a_ref[...]
    x = x_ref[...]

    # Symmetric GCN normalization kept as a [N,1] row-scale vector; A_norm is
    # never materialized:  A_norm @ H == dinv * (A_hat @ (dinv * H)).
    deg = jnp.sum(a_hat, axis=1, keepdims=True)              # [N, 1] (>= 1, self loops)
    dinv = jax.lax.rsqrt(deg)                                # D^{-1/2}

    # ---- layer 1 (reassociated): propagate the raw scalar feature first ----
    # A_norm @ (x @ W1) == (A_norm @ x) * W1-row   because F_in == 1.
    p = dinv * jnp.dot(a_hat, dinv * x,
                       preferred_element_type=jnp.float32)   # [N, 1], one MXU pass
    h = jnp.maximum(p * w1_ref[...] + b1_ref[...], 0.0)      # [N, 16], VPU outer product

    # ---- layer 2: project to the lane-padded class dim, then propagate ----
    h2 = jnp.dot(h, w2_ref[...], preferred_element_type=jnp.float32)      # [N, 128]
    h2 = dinv * jnp.dot(a_hat, dinv * h2,
                        preferred_element_type=jnp.float32) + b2_ref[...]  # [N, 128]

    # ---- log_softmax over the N_CLASSES real lanes only ----
    lane = jax.lax.broadcasted_iota(jnp.int32, h2.shape, 1)
    valid = lane < N_CLASSES
    m = jnp.max(jnp.where(valid, h2, -1e30), axis=1, keepdims=True)
    z = h2 - m
    se = jnp.sum(jnp.where(valid, jnp.exp(z), 0.0), axis=1, keepdims=True)
    o_ref[...] = z - jnp.log(se)   # padded lanes hold junk; sliced off outside


def gcn_forward(a_hat, x, w1, b1, w2, b2):
    """Batched GCN forward.  a_hat: [G, N, N], x: [G, N, 1] -> [G, N, 2]."""
    g, n, _ = a_hat.shape

    # Zero-pad the 2-wide class dim to a full 128-lane slab (lane-dense store).
    w2_pad = jnp.zeros((F_HID, F_PAD), jnp.float32).at[:, :N_CLASSES].set(w2)
    b2_pad = jnp.zeros((1, F_PAD), jnp.float32).at[:, :N_CLASSES].set(b2)

    out_padded = pl.pallas_call(
        gcn_kernel,
        out_shape=jax.ShapeDtypeStruct((g, n, F_PAD), jnp.float32),
        grid=(g,),
        in_specs=[
            pl.BlockSpec((None, n, n), lambda b: (b, 0, 0)),   # A_hat, per graph
            pl.BlockSpec((None, n, 1), lambda b: (b, 0, 0)),   # X, per graph
            pl.BlockSpec((1, F_HID), lambda b: (0, 0)),        # W1 (shared)
            pl.BlockSpec((1, F_HID), lambda b: (0, 0)),        # b1 (shared)
            pl.BlockSpec((F_HID, F_PAD), lambda b: (0, 0)),    # W2 padded (shared)
            pl.BlockSpec((1, F_PAD), lambda b: (0, 0)),        # b2 padded (shared)
        ],
        out_specs=pl.BlockSpec((None, n, F_PAD), lambda b: (b, 0, 0)),
        compiler_params=pltpu.CompilerParams(
            dimension_semantics=("parallel",)),  # graphs split across TCs on v7x
    )(a_hat, x, w1, b1, w2_pad, b2_pad)

    return out_padded[:, :, :N_CLASSES]


def gcn_reference(a_hat, x, w1, b1, w2, b2):
    """Pure-JAX reference (dense GCNConv semantics), vmapped over graphs."""
    def one(a, xx):
        deg = jnp.sum(a, axis=1, keepdims=True)
        dinv = 1.0 / jnp.sqrt(deg)
        a_norm = dinv * a * dinv.reshape(1, -1)
        h = jnp.maximum(a_norm @ (xx @ w1) + b1, 0.0)
        h = a_norm @ (h @ w2) + b2
        return jax.nn.log_softmax(h, axis=1)
    return jax.vmap(one)(a_hat, x)


if __name__ == "__main__":
    key = jax.random.PRNGKey(0)
    k_adj, k_x, k_w1, k_b1, k_w2, k_b2 = jax.random.split(key, 6)

    # Batch of small synthetic G(n, p) random graphs (undirected) + features.
    G, N, P = 4, 128, 0.1
    F_IN = 1

    u = (jax.random.uniform(k_adj, (G, N, N)) < P).astype(jnp.float32)
    upper = jnp.triu(u, k=1)
    adj = upper + jnp.swapaxes(upper, -1, -2)                 # symmetric, no self loops
    a_hat = adj + jnp.eye(N, dtype=jnp.float32)               # add self loops

    x = jax.random.normal(k_x, (G, N, F_IN), dtype=jnp.float32)

    # Deterministic glorot-ish parameter init (GCNConv(1,16) and GCNConv(16,2)).
    def glorot(k, shape):
        fan_in, fan_out = shape
        lim = jnp.sqrt(6.0 / (fan_in + fan_out))
        return jax.random.uniform(k, shape, jnp.float32, -lim, lim)

    w1 = glorot(k_w1, (F_IN, F_HID))
    b1 = jax.random.normal(k_b1, (1, F_HID), dtype=jnp.float32) * 0.01
    w2 = glorot(k_w2, (F_HID, N_CLASSES))
    b2 = jax.random.normal(k_b2, (1, N_CLASSES), dtype=jnp.float32) * 0.01

    out = gcn_forward(a_hat, x, w1, b1, w2, b2)
    out = jax.block_until_ready(out)
    ref = gcn_reference(a_hat, x, w1, b1, w2, b2)

    assert out.shape == (G, N, N_CLASSES)
    # log_softmax rows must exponentiate-sum to ~1, and match the JAX reference.
    row_sums = jnp.sum(jnp.exp(out), axis=-1)
    assert bool(jnp.all(jnp.abs(row_sums - 1.0) < 1e-4))
    assert bool(jnp.allclose(out, ref, atol=1e-4, rtol=1e-4))
    print("KERNEL_OK")
</pallas_src>

<mosaic_0001>
module attributes {stable_mosaic.version = 11 : i64} {
  func.func @gcn_kernel(%arg0: i32, %arg1: memref<1x128x128xf32, #tpu.memory_space<vmem>>, %arg2: memref<1x128x1xf32, #tpu.memory_space<vmem>>, %arg3: memref<1x16xf32, #tpu.memory_space<vmem>>, %arg4: memref<1x16xf32, #tpu.memory_space<vmem>>, %arg5: memref<16x128xf32, #tpu.memory_space<vmem>>, %arg6: memref<1x128xf32, #tpu.memory_space<vmem>>, %arg7: memref<1x128x128xf32, #tpu.memory_space<vmem>>) attributes {dimension_semantics = [#tpu.dimension_semantics<parallel>], iteration_bounds = array<i64: 4>, scalar_prefetch = 0 : i64, scratch_operands = 0 : i64, tpu.core_type = #tpu.core_type<tc>, window_params = [{transform_indices = @transform_0, window_bounds = array<i64: 1, 128, 128>}, {transform_indices = @transform_1, window_bounds = array<i64: 1, 128, 1>}, {pipeline_mode = #tpu.pipeline_mode<synchronous>, transform_indices = @transform_2, window_bounds = array<i64: 1, 16>}, {pipeline_mode = #tpu.pipeline_mode<synchronous>, transform_indices = @transform_3, window_bounds = array<i64: 1, 16>}, {pipeline_mode = #tpu.pipeline_mode<synchronous>, transform_indices = @transform_4, window_bounds = array<i64: 16, 128>}, {pipeline_mode = #tpu.pipeline_mode<synchronous>, transform_indices = @transform_5, window_bounds = array<i64: 1, 128>}, {transform_indices = @transform_6, window_bounds = array<i64: 1, 128, 128>}]} {
    %c0 = arith.constant 0 : index
    %c0_0 = arith.constant 0 : index
    %c0_1 = arith.constant 0 : index
    %0 = vector.load %arg1[%c0, %c0_0, %c0_1] : memref<1x128x128xf32, #tpu.memory_space<vmem>>, vector<1x128x128xf32>
    %1 = vector.shape_cast %0 : vector<1x128x128xf32> to vector<128x128xf32>
    %c0_2 = arith.constant 0 : index
    %c0_3 = arith.constant 0 : index
    %c0_4 = arith.constant 0 : index
    %2 = vector.load %arg2[%c0_2, %c0_3, %c0_4] : memref<1x128x1xf32, #tpu.memory_space<vmem>>, vector<1x128x1xf32>
    %3 = vector.shape_cast %2 : vector<1x128x1xf32> to vector<128x1xf32>
    %cst = arith.constant dense<0.000000e+00> : vector<128xf32>
    %4 = vector.multi_reduction <add>, %1, %cst [1] : vector<128x128xf32> to vector<128xf32>
    %5 = vector.shape_cast %4 : vector<128xf32> to vector<128x1xf32>
    %6 = math.rsqrt %5 : vector<128x1xf32>
    %7 = arith.mulf %6, %3 : vector<128x1xf32>
    %cst_5 = arith.constant dense<0.000000e+00> : vector<128x1xf32>
    %8 = tpu.matmul %1, %7, %cst_5 {dimension_numbers = #tpu.dot_dimension_numbers<[1], [0], [0], [1], [0, 0, 1, 1], [], []>} : vector<128x128xf32>, vector<128x1xf32>, vector<128x1xf32> -> vector<128x1xf32>
    %9 = arith.mulf %6, %8 : vector<128x1xf32>
    %c0_6 = arith.constant 0 : index
    %c0_7 = arith.constant 0 : index
    %10 = vector.load %arg3[%c0_6, %c0_7] : memref<1x16xf32, #tpu.memory_space<vmem>>, vector<1x16xf32>
    %11 = vector.broadcast %9 : vector<128x1xf32> to vector<128x16xf32>
    %12 = vector.broadcast %10 : vector<1x16xf32> to vector<128x16xf32>
    %13 = arith.mulf %11, %12 : vector<128x16xf32>
    %c0_8 = arith.constant 0 : index
    %c0_9 = arith.constant 0 : index
    %14 = vector.load %arg4[%c0_8, %c0_9] : memref<1x16xf32, #tpu.memory_space<vmem>>, vector<1x16xf32>
    %15 = vector.broadcast %14 : vector<1x16xf32> to vector<128x16xf32>
    %16 = arith.addf %13, %15 : vector<128x16xf32>
    %cst_10 = arith.constant 0.000000e+00 : f32
    %17 = vector.broadcast %cst_10 : f32 to vector<128x16xf32>
    %18 = arith.maximumf %16, %17 : vector<128x16xf32>
    %c0_11 = arith.constant 0 : index
    %c0_12 = arith.constant 0 : index
    %19 = vector.load %arg5[%c0_11, %c0_12] : memref<16x128xf32, #tpu.memory_space<vmem>>, vector<16x128xf32>
    %cst_13 = arith.constant dense<0.000000e+00> : vector<128x128xf32>
    %20 = tpu.matmul %18, %19, %cst_13 {dimension_numbers = #tpu.dot_dimension_numbers<[1], [0], [0], [1], [0, 0, 1, 1], [], []>} : vector<128x16xf32>, vector<16x128xf32>, vector<128x128xf32> -> vector<128x128xf32>
    %21 = vector.broadcast %6 : vector<128x1xf32> to vector<128x128xf32>
    %22 = arith.mulf %21, %20 : vector<128x128xf32>
    %cst_14 = arith.constant dense<0.000000e+00> : vector<128x128xf32>
    %23 = tpu.matmul %1, %22, %cst_14 {dimension_numbers = #tpu.dot_dimension_numbers<[1], [0], [0], [1], [0, 0, 1, 1], [], []>} : vector<128x128xf32>, vector<128x128xf32>, vector<128x128xf32> -> vector<128x128xf32>
    %24 = vector.broadcast %6 : vector<128x1xf32> to vector<128x128xf32>
    %25 = arith.mulf %24, %23 : vector<128x128xf32>
    %c0_15 = arith.constant 0 : index
    %c0_16 = arith.constant 0 : index
    %26 = vector.load %arg6[%c0_15, %c0_16] : memref<1x128xf32, #tpu.memory_space<vmem>>, vector<1x128xf32>
    %27 = vector.broadcast %26 : vector<1x128xf32> to vector<128x128xf32>
    %28 = arith.addf %25, %27 : vector<128x128xf32>
    %29 = tpu.iota {dimensions = array<i32: 1>} : vector<128x128xi32>
    %c2_i32 = arith.constant 2 : i32
    %30 = vector.broadcast %c2_i32 : i32 to vector<128x128xi32>
    %31 = arith.cmpi slt, %29, %30 : vector<128x128xi32>
    %cst_17 = arith.constant -1.000000e+30 : f32
    %32 = vector.broadcast %cst_17 : f32 to vector<128x128xf32>
    %33 = arith.select %31, %28, %32 : vector<128x128xi1>, vector<128x128xf32>
    %cst_18 = arith.constant dense<0xFF800000> : vector<128xf32>
    %34 = vector.multi_reduction <maximumf>, %33, %cst_18 [1] : vector<128x128xf32> to vector<128xf32>
    %35 = vector.shape_cast %34 : vector<128xf32> to vector<128x1xf32>
    %36 = vector.broadcast %35 : vector<128x1xf32> to vector<128x128xf32>
    %37 = arith.subf %28, %36 : vector<128x128xf32>
    %38 = math.exp %37 : vector<128x128xf32>
    %cst_19 = arith.constant 0.000000e+00 : f32
    %39 = vector.broadcast %cst_19 : f32 to vector<128x128xf32>
    %40 = arith.select %31, %38, %39 : vector<128x128xi1>, vector<128x128xf32>
    %cst_20 = arith.constant dense<0.000000e+00> : vector<128xf32>
    %41 = vector.multi_reduction <add>, %40, %cst_20 [1] : vector<128x128xf32> to vector<128xf32>
    %42 = vector.shape_cast %41 : vector<128xf32> to vector<128x1xf32>
    %43 = math.log %42 : vector<128x1xf32>
    %44 = vector.broadcast %43 : vector<128x1xf32> to vector<128x128xf32>
    %45 = arith.subf %37, %44 : vector<128x128xf32>
    %c0_21 = arith.constant 0 : index
    %c0_22 = arith.constant 0 : index
    %c0_23 = arith.constant 0 : index
    %46 = vector.load %arg7[%c0_21, %c0_22, %c0_23] : memref<1x128x128xf32, #tpu.memory_space<vmem>>, vector<1x128x128xf32>
    %47 = vector.shape_cast %46 : vector<1x128x128xf32> to vector<128x128xf32>
    %48 = vector.shape_cast %45 : vector<128x128xf32> to vector<1x128x128xf32>
    tpu.vector_store %arg7[%c0_21, %c0_22, %c0_23], %48 {strides = array<i32>} : memref<1x128x128xf32, #tpu.memory_space<vmem>>, vector<1x128x128xf32>,
    return
  }
  func.func @transform_0(%arg0: i32) -> (i32, i32, i32) {
    %c0_i32 = arith.constant 0 : i32
    %c0_i32_0 = arith.constant 0 : i32
    %c0_i32_1 = arith.constant 0 : i32
    return %arg0, %c0_i32, %c0_i32_0 : i32, i32, i32
  }
  func.func @transform_1(%arg0: i32) -> (i32, i32, i32) {
    %c0_i32 = arith.constant 0 : i32
    %c0_i32_0 = arith.constant 0 : i32
    %c0_i32_1 = arith.constant 0 : i32
    return %arg0, %c0_i32, %c0_i32_0 : i32, i32, i32
  }
  func.func @transform_2(%arg0: i32) -> (i32, i32) {
    %c0_i32 = arith.constant 0 : i32
    %c0_i32_0 = arith.constant 0 : i32
    %c0_i32_1 = arith.constant 0 : i32
    return %c0_i32, %c0_i32_0 : i32, i32
  }
  func.func @transform_3(%arg0: i32) -> (i32, i32) {
    %c0_i32 = arith.constant 0 : i32
    %c0_i32_0 = arith.constant 0 : i32
    %c0_i32_1 = arith.constant 0 : i32
    return %c0_i32, %c0_i32_0 : i32, i32
  }
  func.func @transform_4(%arg0: i32) -> (i32, i32) {
    %c0_i32 = arith.constant 0 : i32
    %c0_i32_0 = arith.constant 0 : i32
    %c0_i32_1 = arith.constant 0 : i32
    return %c0_i32, %c0_i32_0 : i32, i32
  }
  func.func @transform_5(%arg0: i32) -> (i32, i32) {
    %c0_i32 = arith.constant 0 : i32
    %c0_i32_0 = arith.constant 0 : i32
    %c0_i32_1 = arith.constant 0 : i32
    return %c0_i32, %c0_i32_0 : i32, i32
  }
  func.func @transform_6(%arg0: i32) -> (i32, i32, i32) {
    %c0_i32 = arith.constant 0 : i32
    %c0_i32_0 = arith.constant 0 : i32
    %c0_i32_1 = arith.constant 0 : i32
    return %arg0, %c0_i32, %c0_i32_0 : i32, i32, i32
  }
}

</mosaic_0001>

<bundles_post_ra>
// kernel: tpu_custom_call.1
= control target key start
LH: loop header
LB: loop body
LE: loop exit
PB: predicated region body
PF: predicated region fallthrough
CT: control target
= control target key end

     0   :  { %11 = vsyncpa [#allocation3], 0  ;;  %s2561_s0 = inlined_call_operand.vmem [shape: f32[4,128,128], index: 0, kind: input, shape index: {}]   ;;  %s2562_s1 = inlined_call_operand.vmem [shape: f32[4,128,1], index: 1, kind: input, shape index: {}]   ;;  %s2563_s2 = inlined_call_operand.vmem [shape: f32[1,16], index: 2, kind: input, shape index: {}]   ;;  %s2564_s3 = inlined_call_operand.vmem [shape: f32[1,16], index: 3, kind: input, shape index: {}]   ;;  %s2565_s4 = inlined_call_operand.vmem [shape: f32[16,128], index: 4, kind: input, shape index: {}]   ;;  %s2566_s5 = inlined_call_operand.vmem [shape: f32[1,128], index: 5, kind: input, shape index: {}]   ;;  %s2567_s6 = inlined_call_operand.hbm [shape: f32[4,128,128], index: 6, kind: output, shape index: {}]  }
   0x1   :  { %13 = vsyncpa [#allocation3 + $0x1], 0  ;;  %s1933_s21 = smov 0   ;;  %s1935_s22 = smov 0  }
   0x2   :  { %s1937_s23 = smov 0   ;;  %s1939_s24 = smov 0  }
   0x3 LB: > { %s1954_s25 = sadd.s32 4294967295, %s1892_s24   ;;  %s1364_s26 = sadd.s32 4294967294, %s1892_s24   ;;  %s1892_s24 = sphi %s1939_s24, %s2573_s24   ;;  %s1888_s23 = sphi %s1937_s23, %s2572_s23   ;;  %s1884_s22 = sphi %s1935_s22, %s2571_s22   ;;  %s1880_s21 = sphi %s1933_s21, %s2570_s21  }
   0x4   : > { %s1958_s27 = sadd.s32 1, %s1892_s24   ;;  %s162_s28 = sadd.s32 1, %s1888_s23 }
   0x5   : > { %s159_s29 = ssub.s32 %s1892_s24, %s1958_s27  ;;  %p172_p0 = scmp.ne.s32.totalorder %s1888_s23, %s1884_s22 }
   0x6   : > { %p160_p1 = scmp.eq.s32.totalorder %s159_s29, 0  ;;  %p173_p2 = scmp.eq.s32.totalorder %s1954_s25, 3 }
   0x7   : > { %p178_p3 = scmp.ne.s32.totalorder %s1884_s22, %s1880_s21  ;;  %p179_p4 = scmp.eq.s32.totalorder %s1364_s26, 3 }
   0x8   : > { %s1969_s30 = scalar_select %p160_p1, %s1888_s23, %s162_s28  }
   0x9   : > { %p1971_p5 = por %p173_p2, %p172_p0  ;;  %p1975_p6 = por %p179_p4, %p178_p3 }
   0xa   : > { %p1367_p7 = scmp.ge.s32.totalorder %s1892_s24, 1  ;;  %p225_p8 = scmp.lt.s32.totalorder %s1892_s24, 5 }
   0xc   : > { %p226_p9 = pnand %p1367_p7, %p225_p8 }
   0xd   : > { %p260_p10 = scmp.lt.s32.totalorder (!%p226_p9), %s1954_s25, 3  ;;  %vm671_vm0 = vcmask (!%p226_p9), 130048   ;;  %s257_s12 = sand.u32 (!%p226_p9), 1, %s1884_s22  }
   0xe   : > { %229 = sbr.rel (%p226_p9) target bundleno = 1407 (0x57f), region = 44  ;;  %s1399_s15 = sshll.u32 (!%p226_p9), %s1954_s25, 11 }
   0xf   : > { %s2511_s19 = scalar_lea.hbm (!%p226_p9), %s2567_s6, %s1399_s15  ;;  %s1895_s26 = smov (!%p226_p9), [#allocation2]  }
  0x10   : > { %s1834_s28 = sshll.u32 (!%p226_p9), %s1895_s26, 4  ;;  %s1835_s28 = int_to_ptr.vmem [resolvable:$false] %s1834_s28 }
  0x11   : > { %s1836_s29 = scalar_lea.vmem (!%p226_p9), %s1835_s28, 4096 }
  0x15   : > { %s1983_s9 = scalar_select %p260_p10, %s1954_s25, 3 }
  0x16   : > { %s2520_s25 = scalar_lea.sflag [#allocation3], %s257_s12 }
  0x17   : > { %s1397_s10 = sshll.u32 %s1983_s9, 7 }
  0x18   : > { %s1991_s13 = scalar_lea.vmem %s2561_s0, %s1397_s10  ;;  %s2063_s16 = scalar_lea.vmem %s2562_s1, %s1397_s10 }
  0x19   : > { %v1994_v0 = vld [vmem:[%s1991_s13 + $0x10] sm:$0xff]  ;;  %v1997_v1 = vld [vmem:[%s1991_s13] sm:$0xff]  ;;  %v2002_v2 = vld [vmem:[%s1991_s13 + $0x18] sm:$0xff] }
  0x1a   : > { %306 = vadd.xlane.f32.xlu1 %v1994_v0  ;;  %302 = vadd.xlane.f32.xlu0 %v1997_v1  ;;  %v2005_v3 = vld [vmem:[%s1991_s13 + $0x8] sm:$0xff]  ;;  %v2014_v5 = vld [vmem:[%s1991_s13 + $0x20] sm:$0xff]  ;;  %v2019_v6 = vld [vmem:[%s1991_s13 + $0x38] sm:$0xff] }
  0x1b   : > { %1514 = vmatprep.mubr.f32.mxu0 %v1997_v1  ;;  %v2011_v4 = vld [vmem:[%s1991_s13 + $0x28] sm:$0xff]  ;;  %v2022_v7 = vld [vmem:[%s1991_s13 + $0x30] sm:$0xff]  ;;  %v2030_v9 = vld [vmem:[%s1991_s13 + $0x40] sm:$0xff] }
  0x1c   : > { %v2027_v8 = vld [vmem:[%s1991_s13 + $0x48] sm:$0xff]  ;;  %v2035_v10 = vld [vmem:[%s1991_s13 + $0x58] sm:$0xff]  ;;  %v2038_v11 = vld [vmem:[%s1991_s13 + $0x50] sm:$0xff] }
  0x1d   : > { %v2043_v12 = vld [vmem:[%s1991_s13 + $0x68] sm:$0xff]  ;;  %v2046_v13 = vld [vmem:[%s1991_s13 + $0x60] sm:$0xff]  ;;  %v2051_v14 = vld [vmem:[%s1991_s13 + $0x78] sm:$0xff] }
  0x1e   : > { %308 = vadd.xlane.f32.xlu1 %v2002_v2  ;;  %304 = vadd.xlane.f32.xlu0 %v2005_v3  ;;  %v2054_v15 = vld [vmem:[%s1991_s13 + $0x70] sm:$0xff]  ;;  %v286_v27 = vld [vmem:[%s2063_s16] sm:$0xff]  ;;  %v287_v28 = vld [vmem:[%s2063_s16 + $0x8] sm:$0xff]  ;;  %s1368_s13 = sshll.u32 %s257_s12, 7 }
  0x1f   : > { %v288_v25 = vld [vmem:[%s2063_s16 + $0x10] sm:$0xff]  ;;  %v289_v29 = vld [vmem:[%s2063_s16 + $0x18] sm:$0xff]  ;;  %v291_v38 = vld [vmem:[%s2063_s16 + $0x28] sm:$0xff]  ;;  %s2477_s14 = scalar_lea.vmem [#allocation2], %s1368_s13 }
  0x20   : > { %v290_v39 = vld [vmem:[%s2063_s16 + $0x20] sm:$0xff]  ;;  %v293_v48 = vld [vmem:[%s2063_s16 + $0x38] sm:$0xff]  ;;  %v292_v49 = vld [vmem:[%s2063_s16 + $0x30] sm:$0xff] }
  0x21   : > { %v295_v57 = vld [vmem:[%s2063_s16 + $0x48] sm:$0xff]  ;;  %v294_v58 = vld [vmem:[%s2063_s16 + $0x40] sm:$0xff] }
  0x22   : > { %312 = vadd.xlane.f32.xlu1 %v2011_v4  ;;  %310 = vadd.xlane.f32.xlu0 %v2014_v5 }
  0x26   : > { %316 = vadd.xlane.f32.xlu1 %v2019_v6  ;;  %314 = vadd.xlane.f32.xlu0 %v2022_v7 }
  0x2a   : > { %320 = vadd.xlane.f32.xlu1 %v2027_v8  ;;  %318 = vadd.xlane.f32.xlu0 %v2030_v9 }
  0x2e   : > { %324 = vadd.xlane.f32.xlu1 %v2035_v10  ;;  %322 = vadd.xlane.f32.xlu0 %v2038_v11 }
  0x32   : > { %328 = vadd.xlane.f32.xlu1 %v2043_v12  ;;  %326 = vadd.xlane.f32.xlu0 %v2046_v13 }
  0x36   : > { %332 = vadd.xlane.f32.xlu1 %v2051_v14  ;;  %330 = vadd.xlane.f32.xlu0 %v2054_v15 }
  0xa7   : > { %v307_v16 = vpop.xlane.xlu1 %306  ;;  %v303_v17 = vpop.xlane.xlu0 %302 }
  0xa8   : > { %1734 = vrsqrt.f32 %v307_v16 }
  0xa9   : > { %1736 = vrsqrt.f32 %v303_v17 }
  0xab   : > { %v309_v18 = vpop.xlane.xlu1 %308  ;;  %v305_v19 = vpop.xlane.xlu0 %304 }
  0xac   : > { %1738 = vrsqrt.f32 %v309_v18  ;;  %v297_v18 = vld [vmem:[%s2063_s16 + $0x58] sm:$0xff] }
  0xad   : > { %1740 = vrsqrt.f32 %v305_v19  ;;  %v296_v19 = vld [vmem:[%s2063_s16 + $0x50] sm:$0xff] }
  0xaf   : > { %v313_v20 = vpop.xlane.xlu1 %312  ;;  %v311_v21 = vpop.xlane.xlu0 %310 }
  0xb0   : > { %1742 = vrsqrt.f32 %v313_v20 }
  0xb1   : > { %1744 = vrsqrt.f32 %v311_v21 }
  0xb2   : > { %v2065_v24 = vpop.eup %1734 }
  0xb3   : > { %v317_v22 = vpop.xlane.xlu1 %316  ;;  %v315_v23 = vpop.xlane.xlu0 %314  ;;  %v352_v34 = vmul.f32 %v2065_v24, %v288_v25 }
  0xb4   : > { %1746 = vrsqrt.f32 %v317_v22  ;;  %v2068_v26 = vpop.eup %1736 }
  0xb5   : > { %1748 = vrsqrt.f32 %v315_v23  ;;  %v350_v35 = vmul.f32 %v2068_v26, %v286_v27  ;;  %v299_v27 = vld [vmem:[%s2063_s16 + $0x68] sm:$0xff] }
  0xb6   : > { %v2073_v30 = vpop.eup %1738 }
  0xb7   : > { %v2075_v31 = vpop.eup %1740  ;;  %v321_v32 = vpop.xlane.xlu1 %320  ;;  %v353_v37 = vmul.f32 %v2073_v30, %v289_v29 }
  0xb8   : > { %v319_v33 = vpop.xlane.xlu0 %318  ;;  %1750 = vrsqrt.f32 %v321_v32  ;;  %v351_v36 = vmul.f32 %v2075_v31, %v287_v28  ;;  %v298_v28 = vld [vmem:[%s2063_s16 + $0x60] sm:$0xff] }
  0xb9   : > { %1752 = vrsqrt.f32 %v319_v33  ;;  %v1626_v46 = vpack.c.bf16 %v353_v37, %v352_v34  ;;  %v300_v37 = vld [vmem:[%s2063_s16 + $0x70] sm:$0xff] }
  0xba   : > { %v2083_v40 = vpop.eup %1742  ;;  %v1622_v41 = vpack.c.bf16 %v351_v36, %v350_v35  ;;  %v301_v36 = vld [vmem:[%s2063_s16 + $0x78] sm:$0xff]  ;;  %s1290_s16 = sshll.u32 %s2477_s14, 4  ;;  %s2513_s16 = int_to_ptr.vmem [resolvable:$true] %s1290_s16 }
  0xbb   : > { %v2085_v42 = vpop.eup %1744  ;;  %v325_v43 = vpop.xlane.xlu1 %324  ;;  %v355_v45 = vmul.f32 %v2083_v40, %v291_v38  ;;  %s1830_s20 = scalar_lea.vmem %s2513_s16, 2048  ;;  %p1837_p0 = scmp.lt.s32.totalorder %s2513_s16, %s1835_s28 }
  0xbc   : > { %v323_v44 = vpop.xlane.xlu0 %322  ;;  %1623 = vmatprep.subr.bf16.mxu0 %v1622_v41  ;;  %1754 = vrsqrt.f32 %v325_v43  ;;  %v354_v47 = vmul.f32 %v2085_v42, %v290_v39  ;;  %p1831_p11 = scmp.ne.s32.totalorder %s2513_s16, %s1830_s20  ;;  %p1838_p1 = scmp.lt.s32.totalorder %s1836_s29, %s1830_s20 }
  0xbd   : > { %1625 = vmatpush3.bf16.msra.mxu0 %v1622_v41  ;;  %1756 = vrsqrt.f32 %v323_v44 }
  0xbe   : > { %v2091_v50 = vpop.eup %1746  ;;  %1627 = vmatprep.subr.bf16.mxu0 %v1626_v46  ;;  %v1630_v51 = vpack.c.bf16 %v355_v45, %v354_v47  ;;  %p1832_p12 = pnand %p1831_p11, %p1971_p5  ;;  %p1839_p2 = por %p1838_p1, %p1837_p0 }
  0xbf   : > { %v2093_v52 = vpop.eup %1748  ;;  %v329_v53 = vpop.xlane.xlu1 %328  ;;  %v357_v55 = vmul.f32 %v2091_v50, %v293_v48 }
  0xc0   : > { %v327_v54 = vpop.xlane.xlu0 %326  ;;  %1758 = vrsqrt.f32 %v329_v53  ;;  %v356_v56 = vmul.f32 %v2093_v52, %v292_v49  ;;  %p1833_p13 = pneg %p1832_p12 }
  0xc1   : > { %1629 = vmatpush3.bf16.msra.mxu0 %v1626_v46  ;;  %1760 = vrsqrt.f32 %v327_v54  ;;  %v1894_v46 = vmov 0   ;;  %v669_v54 = vld [vmem:[%s2565_s4] sm:$0xff] }
  0xc2   : > { %v2099_v59 = vpop.eup %1750  ;;  %1631 = vmatprep.subr.bf16.mxu0 %v1630_v51  ;;  %v1634_v60 = vpack.c.bf16 %v357_v55, %v356_v56  ;;  %1733 = vset.pattern.permute.xlu1 %v1894_v46  ;;  %v670_v55 = vld [vmem:[%s2565_s4 + $0x8] sm:$0xff]  ;;  %p1840_p3 = pnand %p1839_p2, %p1833_p13 }
  0xc3   : > { %v2101_v61 = vpop.eup %1752  ;;  %v333_v62 = vpop.xlane.xlu1 %332  ;;  %v359_v16 = vmul.f32 %v2099_v59, %v295_v57  ;;  %1732 = vset.pattern.permute.xlu0 %v1894_v46 }
  0xc4   : > { %v331_v63 = vpop.xlane.xlu0 %330  ;;  %1762 = vrsqrt.f32 %v333_v62  ;;  %v358_v17 = vmul.f32 %v2101_v61, %v294_v58  ;;  %v1654_v58 = vpack.c.bf16 %v670_v55, %v669_v54 }
  0xc5   : > { %1633 = vmatpush3.bf16.msra.mxu0 %v1630_v51  ;;  %1764 = vrsqrt.f32 %v331_v63 }
  0xc6   : > { %v2107_v20 = vpop.eup %1754  ;;  %1635 = vmatprep.subr.bf16.mxu0 %v1634_v60  ;;  %v1638_v21 = vpack.c.bf16 %v359_v16, %v358_v17  ;;  %1655 = vmatprep.subr.bf16.mxu1 %v1654_v58 }
  0xc7   : > { %v2109_v22 = vpop.eup %1756  ;;  %v361_v23 = vmul.f32 %v2107_v20, %v297_v18  ;;  %1657 = vmatpush3.bf16.msra.mxu1 %v1654_v58 }
  0xc8   : > { %v360_v25 = vmul.f32 %v2109_v22, %v296_v19 }
  0xc9   : > { %1637 = vmatpush3.bf16.msra.mxu0 %v1634_v60 }
  0xca   : > { %v2115_v29 = vpop.eup %1758  ;;  %1639 = vmatprep.subr.bf16.mxu0 %v1638_v21  ;;  %v1642_v32 = vpack.c.bf16 %v361_v23, %v360_v25 }
  0xcb   : > { %v2117_v33 = vpop.eup %1760  ;;  %v363_v34 = vmul.f32 %v2115_v29, %v299_v27 }
  0xcc   : > { %v362_v35 = vmul.f32 %v2117_v33, %v298_v28 }
  0xcd   : > { %1641 = vmatpush3.bf16.msra.mxu0 %v1638_v21 }
  0xce   : > { %v2123_v38 = vpop.eup %1762  ;;  %1643 = vmatprep.subr.bf16.mxu0 %v1642_v32  ;;  %v1646_v39 = vpack.c.bf16 %v363_v34, %v362_v35 }
  0xcf   : > { %v2125_v41 = vpop.eup %1764  ;;  %v365_v43 = vmul.f32 %v2123_v38, %v301_v36 }
  0xd0   : > { %v364_v44 = vmul.f32 %v2125_v41, %v300_v37 }
  0xd1   : > { %1645 = vmatpush3.bf16.msra.mxu0 %v1642_v32 }
  0xd2   : > { %1647 = vmatprep.subr.bf16.mxu0 %v1646_v39  ;;  %v1650_v45 = vpack.c.bf16 %v365_v43, %v364_v44 }
  0xd5   : > { %1649 = vmatpush3.bf16.msra.mxu0 %v1646_v39 }
  0xd6   : > { %1651 = vmatprep.subr.bf16.mxu0 %v1650_v45 }
  0xd9   : > { %1653 = vmatpush3.bf16.msra.mxu0 %v1650_v45 }
  0xdc   : > { %1515 = vmatmul.mubr.f32.vlgmr.msra.gmra.mrb[0].mxu0 %v2005_v3 }
  0xdd   : > { %1517 = vmatprep.mubr.f32.mxu0 %v1994_v0 }
  0xe0   : > { %1518 = vmatmul.mubr.f32.gmra.mrb[2].mxu0 %v2002_v2 }
  0xe1   : > { %1520 = vmatprep.mubr.f32.mxu0 %v2014_v5 }
  0xe4   : > { %1521 = vmatmul.mubr.f32.gmra.mrb[4].mxu0 %v2011_v4 }
  0xe5   : > { %1523 = vmatprep.mubr.f32.mxu0 %v2022_v7 }
  0xe8   : > { %1524 = vmatmul.mubr.f32.gmra.mrb[6].mxu0 %v2019_v6 }
  0xe9   : > { %1526 = vmatprep.mubr.f32.mxu0 %v2030_v9 }
  0xec   : > { %1527 = vmatmul.mubr.f32.gmra.mrb[8].mxu0 %v2027_v8 }
  0xed   : > { %1529 = vmatprep.mubr.f32.mxu0 %v2038_v11 }
  0xf0   : > { %1530 = vmatmul.mubr.f32.gmra.mrb[10].mxu0 %v2035_v10 }
  0xf1   : > { %1532 = vmatprep.mubr.f32.mxu0 %v2046_v13 }
  0xf4   : > { %1533 = vmatmul.mubr.f32.gmra.mrb[12].mxu0 %v2043_v12 }
  0xf5   : > { %1535 = vmatprep.mubr.f32.mxu0 %v2054_v15 }
  0xf8   : > { %1536 = vmatmul.mubr.f32.gmra.mrb[14].mxu0 %v2051_v14 }
 0x1af   : > { %v1516_v47 = vpop.f32.mrb[0].mxu0 }
 0x1b0   : > { %v512_v48 = vmul.f32 %v2075_v31, %v1516_v47  ;;  %v432_v49 = vpop.f32.mrb[1].mxu0 }
 0x1b1   : > { %v511_v51 = vmul.f32 %v2068_v26, %v432_v49 }
 0x1b2   : > { %535 = vperm.xlu1 %1733, %v512_v48  }
 0x1b3   : > { %530 = vperm.xlu0 %1732, %v511_v51   ;;  %v1519_v53 = vpop.f32.mrb[2].mxu0  ;;  %v2169_v51 = vld [vmem:[%s2563_s2] ss:$0 sm:$0xff] }
 0x1b4   : > { %v514_v56 = vmul.f32 %v2073_v30, %v1519_v53  ;;  %v442_v57 = vpop.f32.mrb[3].mxu0  ;;  %v2174_v53 = vld [vmem:[%s2564_s3] ss:$0 sm:$0xff] }
 0x1b5   : > { %v513_v62 = vmul.f32 %v2065_v24, %v442_v57 }
 0x1b6   : > { %545 = vperm.xlu1 %1733, %v514_v56  }
 0x1b7   : > { %v1522_v60 = vpop.f32.mrb[4].mxu0 }
 0x1b8   : > { %v452_v63 = vpop.f32.mrb[5].mxu0  ;;  %v516_v17 = vmul.f32 %v2083_v40, %v1522_v60 }
 0x1b9   : > { %v515_v21 = vmul.f32 %v2085_v42, %v452_v63 }
 0x1ba   : > { %540 = vperm.xlu1 %1733, %v513_v62  }
 0x1bb   : > { %v1525_v16 = vpop.f32.mrb[6].mxu0 }
 0x1bc   : > { %v462_v18 = vpop.f32.mrb[7].mxu0  ;;  %v518_v28 = vmul.f32 %v2091_v50, %v1525_v16 }
 0x1bd   : > { %v517_v36 = vmul.f32 %v2093_v52, %v462_v18 }
 0x1be   : > { %555 = vperm.xlu1 %1733, %v516_v17  }
 0x1bf   : > { %v1528_v19 = vpop.f32.mrb[8].mxu0 }
 0x1c0   : > { %v520_v23 = vmul.f32 %v2099_v59, %v1528_v19  ;;  %v472_v25 = vpop.f32.mrb[9].mxu0 }
 0x1c1   : > { %v519_v44 = vmul.f32 %v2101_v61, %v472_v25 }
 0x1c2   : > { %550 = vperm.xlu1 %1733, %v515_v21   ;;  %575 = vperm.xlu0 %1732, %v520_v23  }
 0x1c3   : > { %v1531_v27 = vpop.f32.mrb[10].mxu0 }
 0x1c4   : > { %v522_v32 = vmul.f32 %v2107_v20, %v1531_v27  ;;  %v482_v34 = vpop.f32.mrb[11].mxu0 }
 0x1c5   : > { %v521_v47 = vmul.f32 %v2109_v22, %v482_v34 }
 0x1c6   : > { %565 = vperm.xlu1 %1733, %v518_v28   ;;  %585 = vperm.xlu0 %1732, %v522_v32  }
 0x1c7   : > { %v1534_v35 = vpop.f32.mrb[12].mxu0 }
 0x1c8   : > { %v524_v37 = vmul.f32 %v2115_v29, %v1534_v35  ;;  %v492_v39 = vpop.f32.mrb[13].mxu0 }
 0x1c9   : > { %v523_v48 = vmul.f32 %v2117_v33, %v492_v39 }
 0x1ca   : > { %560 = vperm.xlu1 %1733, %v517_v36   ;;  %595 = vperm.xlu0 %1732, %v524_v37  }
 0x1cb   : > { %v1537_v43 = vpop.f32.mrb[14].mxu0 }
 0x1cc   : > { %v526_v45 = vmul.f32 %v2123_v38, %v1537_v43  ;;  %v502_v46 = vpop.f32.mrb[15].mxu0 }
 0x1cd   : > { %v525_v49 = vmul.f32 %v2125_v41, %v502_v46 }
 0x1ce   : > { %570 = vperm.xlu1 %1733, %v519_v44   ;;  %605 = vperm.xlu0 %1732, %v526_v45  }
 0x1d2   : > { %580 = vperm.xlu1 %1733, %v521_v47  }
 0x1d6   : > { %590 = vperm.xlu1 %1733, %v523_v48  }
 0x1da   : > { %600 = vperm.xlu1 %1733, %v525_v49  }
 0x231   : > { %v536_v54 = vpop.permute.xlu1 %535 }
 0x232   : > { %v615_v55 = vmul.f32 %v2169_v51, %v536_v54  ;;  %v531_v56 = vpop.permute.xlu0 %530 }
 0x233   : > { %v614_v57 = vmul.f32 %v2169_v51, %v531_v56 }
 0x234   : > { %v638_v58 = vadd.f32 %v2174_v53, %v615_v55 }
 0x235   : > { %v546_v60 = vpop.permute.xlu1 %545  ;;  %v637_v62 = vadd.f32 %v2174_v53, %v614_v57 }
 0x236   : > { %v617_v63 = vmul.f32 %v2169_v51, %v546_v60  ;;  %v654_v17 = vmax.f32 %v638_v58, 0.0 }
 0x237   : > { %v653_v16 = vmax.f32 %v637_v62, 0.0 }
 0x238   : > { %v640_v21 = vadd.f32 %v2174_v53, %v617_v63 }
 0x239   : > { %1542 = vmatprep.mubr.msk.f32.mxu1 %vm671_vm0, %v653_v16  ;;  %v541_v18 = vpop.permute.xlu1 %540 }
 0x23a   : > { %v616_v19 = vmul.f32 %v2169_v51, %v541_v18  ;;  %1543 = vmatmul.mubr.msk.f32.vlgmr.msra.gmra.mrb[0].mxu1 %vm671_vm0, %v654_v17  ;;  %v656_v28 = vmax.f32 %v640_v21, 0.0 }
 0x23c   : > { %v639_v23 = vadd.f32 %v2174_v53, %v616_v19 }
 0x23d   : > { %v556_v25 = vpop.permute.xlu1 %555 }
 0x23e   : > { %v655_v27 = vmax.f32 %v639_v23, 0.0  ;;  %v619_v32 = vmul.f32 %v2169_v51, %v556_v25 }
 0x240   : > { %1545 = vmatprep.mubr.msk.f32.mxu1 %vm671_vm0, %v655_v27  ;;  %v642_v37 = vadd.f32 %v2174_v53, %v619_v32 }
 0x241   : > { %1546 = vmatmul.mubr.msk.f32.gmra.mrb[2].mxu1 %vm671_vm0, %v656_v28  ;;  %v551_v34 = vpop.permute.xlu1 %550  ;;  %v576_v36 = vpop.permute.xlu0 %575 }
 0x242   : > { %v618_v35 = vmul.f32 %v2169_v51, %v551_v34  ;;  %v658_v45 = vmax.f32 %v642_v37, 0.0  ;;  %v623_v54 = vmul.f32 %v2169_v51, %v576_v36 }
 0x244   : > { %v641_v39 = vadd.f32 %v2174_v53, %v618_v35  ;;  %v646_v63 = vadd.f32 %v2174_v53, %v623_v54 }
 0x245   : > { %v566_v43 = vpop.permute.xlu1 %565  ;;  %v586_v47 = vpop.permute.xlu0 %585 }
 0x246   : > { %v657_v44 = vmax.f32 %v641_v39, 0.0  ;;  %v621_v46 = vmul.f32 %v2169_v51, %v566_v43  ;;  %v625_v17 = vmul.f32 %v2169_v51, %v586_v47  ;;  %v662_v25 = vmax.f32 %v646_v63, 0.0 }
 0x248   : > { %1548 = vmatprep.mubr.msk.f32.mxu1 %vm671_vm0, %v657_v44  ;;  %v644_v55 = vadd.f32 %v2174_v53, %v621_v46  ;;  %v648_v27 = vadd.f32 %v2174_v53, %v625_v17 }
 0x249   : > { %1549 = vmatmul.mubr.msk.f32.gmra.mrb[4].mxu1 %vm671_vm0, %v658_v45  ;;  %v561_v48 = vpop.permute.xlu1 %560  ;;  %v596_v60 = vpop.permute.xlu0 %595 }
 0x24a   : > { %v620_v49 = vmul.f32 %v2169_v51, %v561_v48  ;;  %v660_v16 = vmax.f32 %v644_v55, 0.0  ;;  %v627_v28 = vmul.f32 %v2169_v51, %v596_v60  ;;  %v664_v39 = vmax.f32 %v648_v27, 0.0 }
 0x24c   : > { %v643_v56 = vadd.f32 %v2174_v53, %v620_v49  ;;  %v650_v43 = vadd.f32 %v2174_v53, %v627_v28 }
 0x24d   : > { %v571_v57 = vpop.permute.xlu1 %570  ;;  %v606_v32 = vpop.permute.xlu0 %605 }
 0x24e   : > { %v659_v58 = vmax.f32 %v643_v56, 0.0  ;;  %v622_v62 = vmul.f32 %v2169_v51, %v571_v57  ;;  %v629_v44 = vmul.f32 %v2169_v51, %v606_v32  ;;  %v666_v49 = vmax.f32 %v650_v43, 0.0 }
 0x250   : > { %v645_v18 = vadd.f32 %v2174_v53, %v622_v62  ;;  %1551 = vmatprep.mubr.msk.f32.mxu1 %vm671_vm0, %v659_v58  ;;  %v652_v54 = vadd.f32 %v2174_v53, %v629_v44 }
 0x251   : > { %1552 = vmatmul.mubr.msk.f32.gmra.mrb[6].mxu1 %vm671_vm0, %v660_v16  ;;  %v581_v19 = vpop.permute.xlu1 %580 }
 0x252   : > { %v661_v21 = vmax.f32 %v645_v18, 0.0  ;;  %v624_v23 = vmul.f32 %v2169_v51, %v581_v19  ;;  %v668_v57 = vmax.f32 %v652_v54, 0.0 }
 0x254   : > { %v647_v34 = vadd.f32 %v2174_v53, %v624_v23  ;;  %1554 = vmatprep.mubr.msk.f32.mxu1 %vm671_vm0, %v661_v21 }
 0x255   : > { %1555 = vmatmul.mubr.msk.f32.gmra.mrb[8].mxu1 %vm671_vm0, %v662_v25  ;;  %v591_v35 = vpop.permute.xlu1 %590 }
 0x256   : > { %v663_v36 = vmax.f32 %v647_v34, 0.0  ;;  %v626_v37 = vmul.f32 %v2169_v51, %v591_v35 }
 0x258   : > { %v649_v45 = vadd.f32 %v2174_v53, %v626_v37  ;;  %1557 = vmatprep.mubr.msk.f32.mxu1 %vm671_vm0, %v663_v36 }
 0x259   : > { %1558 = vmatmul.mubr.msk.f32.gmra.mrb[10].mxu1 %vm671_vm0, %v664_v39  ;;  %v601_v46 = vpop.permute.xlu1 %600 }
 0x25a   : > { %v665_v47 = vmax.f32 %v649_v45, 0.0  ;;  %v628_v48 = vmul.f32 %v2169_v51, %v601_v46 }
 0x25c   : > { %v651_v55 = vadd.f32 %v2174_v53, %v628_v48  ;;  %1560 = vmatprep.mubr.msk.f32.mxu1 %vm671_vm0, %v665_v47 }
 0x25d   : > { %1561 = vmatmul.mubr.msk.f32.gmra.mrb[12].mxu1 %vm671_vm0, %v666_v49 }
 0x25e   : > { %v667_v56 = vmax.f32 %v651_v55, 0.0 }
 0x260   : > { %1563 = vmatprep.mubr.msk.f32.mxu1 %vm671_vm0, %v667_v56 }
 0x261   : > { %1564 = vmatmul.mubr.msk.f32.gmra.mrb[14].mxu1 %vm671_vm0, %v668_v57 }
 0x262   : > { %1598 = vmatprep.mubr.f32.mxu1 %v1997_v1 }
 0x30d   : > { %v1544_v58 = vpop.f32.mrb[0].mxu1 }
 0x30e   : > { %v866_v51 = vmul.f32 %v2075_v31, %v1544_v58  ;;  %v786_v60 = vpop.f32.mrb[1].mxu1 }
 0x30f   : > { %v865_v62 = vmul.f32 %v2068_v26, %v786_v60 }
 0x311   : > { %v1658_v63 = vpack.c.bf16 %v866_v51, %v865_v62 }
 0x313   : > { %1659 = vmatprep.subr.bf16.mxu1 %v1658_v63 }
 0x314   : > { %v1547_v53 = vpop.f32.mrb[2].mxu1  ;;  %1661 = vmatpush3.bf16.msra.mxu1 %v1658_v63 }
 0x315   : > { %v868_v16 = vmul.f32 %v2073_v30, %v1547_v53  ;;  %v796_v17 = vpop.f32.mrb[3].mxu1 }
 0x316   : > { %v867_v18 = vmul.f32 %v2065_v24, %v796_v17 }
 0x318   : > { %v1662_v19 = vpack.c.bf16 %v868_v16, %v867_v18 }
 0x31a   : > { %1663 = vmatprep.subr.bf16.mxu1 %v1662_v19 }
 0x31b   : > { %1665 = vmatpush3.bf16.msra.mxu1 %v1662_v19 }
 0x31c   : > { %v1550_v21 = vpop.f32.mrb[4].mxu1 }
 0x31d   : > { %v870_v1 = vmul.f32 %v2083_v40, %v1550_v21  ;;  %v806_v23 = vpop.f32.mrb[5].mxu1 }
 0x31e   : > { %v869_v25 = vmul.f32 %v2085_v42, %v806_v23 }
 0x320   : > { %v1666_v27 = vpack.c.bf16 %v870_v1, %v869_v25 }
 0x322   : > { %1667 = vmatprep.subr.bf16.mxu1 %v1666_v27 }
 0x323   : > { %1669 = vmatpush3.bf16.msra.mxu1 %v1666_v27 }
 0x324   : > { %v1553_v28 = vpop.f32.mrb[6].mxu1 }
 0x325   : > { %v872_v32 = vmul.f32 %v2091_v50, %v1553_v28  ;;  %v816_v34 = vpop.f32.mrb[7].mxu1 }
 0x326   : > { %v871_v35 = vmul.f32 %v2093_v52, %v816_v34 }
 0x328   : > { %v1670_v36 = vpack.c.bf16 %v872_v32, %v871_v35  ;;  %v1556_v37 = vpop.f32.mrb[8].mxu1 }
 0x329   : > { %v874_v39 = vmul.f32 %v2099_v59, %v1556_v37  ;;  %v826_v43 = vpop.f32.mrb[9].mxu1 }
 0x32a   : > { %v873_v44 = vmul.f32 %v2101_v61, %v826_v43  ;;  %1671 = vmatprep.subr.bf16.mxu1 %v1670_v36 }
 0x32b   : > { %1673 = vmatpush3.bf16.msra.mxu1 %v1670_v36 }
 0x32c   : > { %v1674_v45 = vpack.c.bf16 %v874_v39, %v873_v44  ;;  %v1559_v46 = vpop.f32.mrb[10].mxu1 }
 0x32d   : > { %v876_v47 = vmul.f32 %v2107_v20, %v1559_v46  ;;  %v836_v48 = vpop.f32.mrb[11].mxu1 }
 0x32e   : > { %v875_v49 = vmul.f32 %v2109_v22, %v836_v48  ;;  %1675 = vmatprep.subr.bf16.mxu1 %v1674_v45 }
 0x32f   : > { %1677 = vmatpush3.bf16.msra.mxu1 %v1674_v45 }
 0x330   : > { %v1678_v54 = vpack.c.bf16 %v876_v47, %v875_v49  ;;  %v1562_v55 = vpop.f32.mrb[12].mxu1 }
 0x331   : > { %v878_v56 = vmul.f32 %v2115_v29, %v1562_v55  ;;  %v846_v57 = vpop.f32.mrb[13].mxu1 }
 0x332   : > { %v877_v58 = vmul.f32 %v2117_v33, %v846_v57  ;;  %1679 = vmatprep.subr.bf16.mxu1 %v1678_v54 }
 0x333   : > { %1681 = vmatpush3.bf16.msra.mxu1 %v1678_v54 }
 0x334   : > { %v1682_v51 = vpack.c.bf16 %v878_v56, %v877_v58  ;;  %v1565_v60 = vpop.f32.mrb[14].mxu1 }
 0x335   : > { %v880_v62 = vmul.f32 %v2123_v38, %v1565_v60  ;;  %v856_v63 = vpop.f32.mrb[15].mxu1 }
 0x336   : > { %v879_v53 = vmul.f32 %v2125_v41, %v856_v63  ;;  %1683 = vmatprep.subr.bf16.mxu1 %v1682_v51 }
 0x337   : > { %1685 = vmatpush3.bf16.msra.mxu1 %v1682_v51 }
 0x338   : > { %v1686_v16 = vpack.c.bf16 %v880_v62, %v879_v53 }
 0x33a   : > { %1687 = vmatprep.subr.bf16.mxu1 %v1686_v16 }
 0x33b   : > { %1689 = vmatpush3.bf16.msra.mxu1 %v1686_v16 }
 0x33e   : > { %1599 = vmatmul.mubr.f32.vlgmr.msra.gmra.mrb[16].mxu1 %v2005_v3 }
 0x33f   : > { %1601 = vmatprep.mubr.f32.mxu1 %v1994_v0  ;;  %v1065_v0 = vlaneseq }
 0x342   : > { %1602 = vmatmul.mubr.f32.gmra.mrb[18].mxu1 %v2002_v2  ;;  %v2256_v2 = vand.u32 127, %v1065_v0 }
 0x343   : > { %1604 = vmatprep.mubr.f32.mxu1 %v2014_v5 }
 0x344   : > { %vm1067_vm1 = vcmp.lt.s32.totalorder %v2256_v2, 2 }
 0x346   : > { %1605 = vmatmul.mubr.f32.gmra.mrb[20].mxu1 %v2011_v4  ;;  %v2261_v4 = vld [vmem:[%s2566_s5] ss:$0 sm:$0xff] }
 0x347   : > { %1607 = vmatprep.mubr.f32.mxu1 %v2022_v7 }
 0x34a   : > { %1608 = vmatmul.mubr.f32.gmra.mrb[22].mxu1 %v2019_v6 }
 0x34b   : > { %1610 = vmatprep.mubr.f32.mxu1 %v2030_v9 }
 0x34e   : > { %1611 = vmatmul.mubr.f32.gmra.mrb[24].mxu1 %v2027_v8 }
 0x34f   : > { %1613 = vmatprep.mubr.f32.mxu1 %v2038_v11 }
 0x352   : > { %1614 = vmatmul.mubr.f32.gmra.mrb[26].mxu1 %v2035_v10 }
 0x353   : > { %1616 = vmatprep.mubr.f32.mxu1 %v2046_v13 }
 0x356   : > { %1617 = vmatmul.mubr.f32.gmra.mrb[28].mxu1 %v2043_v12 }
 0x357   : > { %1619 = vmatprep.mubr.f32.mxu1 %v2054_v15 }
 0x35a   : > { %1620 = vmatmul.mubr.f32.gmra.mrb[30].mxu1 %v2051_v14 }
 0x411   : > { %v1600_v3 = vpop.f32.mrb[16].mxu1 }
 0x412   : > { %v1027_v5 = vmul.f32 %v2075_v31, %v1600_v3  ;;  %v947_v6 = vpop.f32.mrb[17].mxu1 }
 0x413   : > { %v1026_v7 = vmul.f32 %v2068_v26, %v947_v6 }
 0x414   : > { %v2267_v8 = vadd.f32 %v2261_v4, %v1027_v5 }
 0x415   : > { %v1603_v9 = vpop.f32.mrb[18].mxu1  ;;  %v2270_v10 = vadd.f32 %v2261_v4, %v1026_v7 }
 0x416   : > { %v1029_v11 = vmul.f32 %v2073_v30, %v1603_v9  ;;  %v957_v12 = vpop.f32.mrb[19].mxu1  ;;  %v1069_v13 = vsel %vm1067_vm1, %v2267_v8, -1e+30 }
 0x417   : > { %v1028_v14 = vmul.f32 %v2065_v24, %v957_v12  ;;  %1086 = vmax.xlane.f32.xlu0 %v1069_v13  ;;  %v1068_v15 = vsel %vm1067_vm1, %v2270_v10, -1e+30 }
 0x418   : > { %1084 = vmax.xlane.f32.xlu1 %v1068_v15  ;;  %v2281_v26 = vadd.f32 %v2261_v4, %v1029_v11 }
 0x419   : > { %v1606_v31 = vpop.f32.mrb[20].mxu1  ;;  %v2284_v17 = vadd.f32 %v2261_v4, %v1028_v14 }
 0x41a   : > { %v1031_v30 = vmul.f32 %v2083_v40, %v1606_v31  ;;  %v967_v18 = vpop.f32.mrb[21].mxu1  ;;  %v1071_v24 = vsel %vm1067_vm1, %v2281_v26, -1e+30 }
 0x41b   : > { %v1030_v19 = vmul.f32 %v2085_v42, %v967_v18  ;;  %v1070_v21 = vsel %vm1067_vm1, %v2284_v17, -1e+30 }
 0x41c   : > { %1090 = vmax.xlane.f32.xlu1 %v1071_v24  ;;  %1088 = vmax.xlane.f32.xlu0 %v1070_v21  ;;  %v2295_v1 = vadd.f32 %v2261_v4, %v1031_v30 }
 0x41d   : > { %v1609_v23 = vpop.f32.mrb[22].mxu1  ;;  %v2298_v25 = vadd.f32 %v2261_v4, %v1030_v19 }
 0x41e   : > { %v1033_v40 = vmul.f32 %v2091_v50, %v1609_v23  ;;  %v977_v27 = vpop.f32.mrb[23].mxu1  ;;  %v1073_v42 = vsel %vm1067_vm1, %v2295_v1, -1e+30 }
 0x41f   : > { %v1032_v28 = vmul.f32 %v2093_v52, %v977_v27  ;;  %v1072_v32 = vsel %vm1067_vm1, %v2298_v25, -1e+30 }
 0x420   : > { %1094 = vmax.xlane.f32.xlu1 %v1073_v42  ;;  %1092 = vmax.xlane.f32.xlu0 %v1072_v32  ;;  %v2309_v34 = vadd.f32 %v2261_v4, %v1033_v40 }
 0x421   : > { %v1612_v35 = vpop.f32.mrb[24].mxu1  ;;  %v2312_v36 = vadd.f32 %v2261_v4, %v1032_v28 }
 0x422   : > { %v1035_v50 = vmul.f32 %v2099_v59, %v1612_v35  ;;  %v987_v37 = vpop.f32.mrb[25].mxu1  ;;  %v1075_v52 = vsel %vm1067_vm1, %v2309_v34, -1e+30 }
 0x423   : > { %v1034_v39 = vmul.f32 %v2101_v61, %v987_v37  ;;  %v1074_v43 = vsel %vm1067_vm1, %v2312_v36, -1e+30 }
 0x424   : > { %1098 = vmax.xlane.f32.xlu1 %v1075_v52  ;;  %1096 = vmax.xlane.f32.xlu0 %v1074_v43  ;;  %v2323_v44 = vadd.f32 %v2261_v4, %v1035_v50 }
 0x425   : > { %v1615_v45 = vpop.f32.mrb[26].mxu1  ;;  %v2326_v46 = vadd.f32 %v2261_v4, %v1034_v39 }
 0x426   : > { %v1037_v59 = vmul.f32 %v2107_v20, %v1615_v45  ;;  %v997_v47 = vpop.f32.mrb[27].mxu1  ;;  %v1077_v61 = vsel %vm1067_vm1, %v2323_v44, -1e+30 }
 0x427   : > { %v1036_v48 = vmul.f32 %v2109_v22, %v997_v47  ;;  %v1076_v49 = vsel %vm1067_vm1, %v2326_v46, -1e+30 }
 0x428   : > { %1102 = vmax.xlane.f32.xlu1 %v1077_v61  ;;  %1100 = vmax.xlane.f32.xlu0 %v1076_v49  ;;  %v2337_v54 = vadd.f32 %v2261_v4, %v1037_v59 }
 0x429   : > { %v1618_v55 = vpop.f32.mrb[28].mxu1  ;;  %v2340_v56 = vadd.f32 %v2261_v4, %v1036_v48 }
 0x42a   : > { %v1039_v20 = vmul.f32 %v2115_v29, %v1618_v55  ;;  %v1007_v57 = vpop.f32.mrb[29].mxu1  ;;  %v1079_v22 = vsel %vm1067_vm1, %v2337_v54, -1e+30 }
 0x42b   : > { %v1038_v58 = vmul.f32 %v2117_v33, %v1007_v57  ;;  %v1078_v51 = vsel %vm1067_vm1, %v2340_v56, -1e+30 }
 0x42c   : > { %1106 = vmax.xlane.f32.xlu1 %v1079_v22  ;;  %1104 = vmax.xlane.f32.xlu0 %v1078_v51  ;;  %v2351_v60 = vadd.f32 %v2261_v4, %v1039_v20 }
 0x42d   : > { %v1621_v62 = vpop.f32.mrb[30].mxu1  ;;  %v2354_v63 = vadd.f32 %v2261_v4, %v1038_v58 }
 0x42e   : > { %v1041_v29 = vmul.f32 %v2123_v38, %v1621_v62  ;;  %v1017_v53 = vpop.f32.mrb[31].mxu1  ;;  %v1081_v33 = vsel %vm1067_vm1, %v2351_v60, -1e+30 }
 0x42f   : > { %v1040_v16 = vmul.f32 %v2125_v41, %v1017_v53  ;;  %v1080_v0 = vsel %vm1067_vm1, %v2354_v63, -1e+30 }
 0x430   : > { %1110 = vmax.xlane.f32.xlu1 %v1081_v33  ;;  %1108 = vmax.xlane.f32.xlu0 %v1080_v0  ;;  %v2365_v3 = vadd.f32 %v2261_v4, %v1041_v29 }
 0x431   : > { %v2368_v5 = vadd.f32 %v2261_v4, %v1040_v16 }
 0x432   : > { %v1083_v38 = vsel %vm1067_vm1, %v2365_v3, -1e+30 }
 0x433   : > { %v1082_v41 = vsel %vm1067_vm1, %v2368_v5, -1e+30 }
 0x434   : > { %1114 = vmax.xlane.f32.xlu1 %v1083_v38  ;;  %1112 = vmax.xlane.f32.xlu0 %v1082_v41 }
 0x4a4   : > { %v1087_v6 = vpop.xlane.xlu0 %1086 }
 0x4a5   : > { %v2377_v7 = vsub.f32 %v2267_v8, %v1087_v6  ;;  %v1085_v9 = vpop.xlane.xlu1 %1084 }
 0x4a6   : > { %v2380_v11 = vsub.f32 %v2270_v10, %v1085_v9 }
 0x4a7   : > { %v1134_v4 = vmul.f32 1.442695, %v2377_v7 }
 0x4a8   : > { %v1132_v12 = vmul.f32 1.442695, %v2380_v11 }
 0x4a9   : > { %1766 = vpow2.f32 %v1134_v4  ;;  %v1091_v13 = vpop.xlane.xlu1 %1090  ;;  %v1089_v14 = vpop.xlane.xlu0 %1088 }
 0x4aa   : > { %1768 = vpow2.f32 %v1132_v12  ;;  %v2385_v15 = vsub.f32 %v2281_v26, %v1091_v13  ;;  %v2388_v31 = vsub.f32 %v2284_v17, %v1089_v14 }
 0x4ac   : > { %v1138_v8 = vmul.f32 1.442695, %v2385_v15  ;;  %v1136_v30 = vmul.f32 1.442695, %v2388_v31 }
 0x4ad   : > { %v1095_v10 = vpop.xlane.xlu1 %1094  ;;  %v1093_v18 = vpop.xlane.xlu0 %1092 }
 0x4ae   : > { %1770 = vpow2.f32 %v1138_v8  ;;  %v2393_v24 = vsub.f32 %v2295_v1, %v1095_v10  ;;  %v2396_v19 = vsub.f32 %v2298_v25, %v1093_v18 }
 0x4af   : > { %1772 = vpow2.f32 %v1136_v30 }
 0x4b0   : > { %v1142_v26 = vmul.f32 1.442695, %v2393_v24  ;;  %v1140_v21 = vmul.f32 1.442695, %v2396_v19 }
 0x4b1   : > { %v1099_v17 = vpop.xlane.xlu1 %1098  ;;  %v1097_v23 = vpop.xlane.xlu0 %1096 }
 0x4b2   : > { %1774 = vpow2.f32 %v1142_v26  ;;  %v2401_v40 = vsub.f32 %v2309_v34, %v1099_v17  ;;  %v2404_v27 = vsub.f32 %v2312_v36, %v1097_v23 }
 0x4b3   : > { %v1767_v42 = vpop.eup %1766  ;;  %1776 = vpow2.f32 %v1140_v21 }
 0x4b4   : > { %v1769_v1 = vpop.eup %1768  ;;  %v1146_v25 = vmul.f32 1.442695, %v2401_v40  ;;  %v1144_v28 = vmul.f32 1.442695, %v2404_v27  ;;  %v1165_v32 = vsel %vm1067_vm1, %v1767_v42, 0.0 }
 0x4b5   : > { %v1103_v35 = vpop.xlane.xlu1 %1102  ;;  %v1101_v50 = vpop.xlane.xlu0 %1100  ;;  %1182 = vadd.xlane.f32.xlu1 %v1165_v32  ;;  %v1164_v34 = vsel %vm1067_vm1, %v1769_v1, 0.0 }
 0x4b6   : > { %1778 = vpow2.f32 %v1146_v25  ;;  %v2413_v36 = vsub.f32 %v2323_v44, %v1103_v35  ;;  %v2416_v37 = vsub.f32 %v2326_v46, %v1101_v50  ;;  %1180 = vadd.xlane.f32.xlu0 %v1164_v34 }
 0x4b7   : > { %1780 = vpow2.f32 %v1144_v28 }
 0x4b8   : > { %v1771_v52 = vpop.eup %1770  ;;  %v1150_v39 = vmul.f32 1.442695, %v2413_v36  ;;  %v1148_v43 = vmul.f32 1.442695, %v2416_v37 }
 0x4b9   : > { %v1773_v45 = vpop.eup %1772  ;;  %v1107_v59 = vpop.xlane.xlu1 %1106  ;;  %v1167_v61 = vsel %vm1067_vm1, %v1771_v52, 0.0 }
 0x4ba   : > { %v1105_v47 = vpop.xlane.xlu0 %1104  ;;  %1782 = vpow2.f32 %v1150_v39  ;;  %v2423_v44 = vsub.f32 %v2337_v54, %v1107_v59  ;;  %1186 = vadd.xlane.f32.xlu1 %v1167_v61  ;;  %v1166_v48 = vsel %vm1067_vm1, %v1773_v45, 0.0 }
 0x4bb   : > { %v2426_v46 = vsub.f32 %v2340_v56, %v1105_v47  ;;  %1784 = vpow2.f32 %v1148_v43  ;;  %1184 = vadd.xlane.f32.xlu0 %v1166_v48 }
 0x4bc   : > { %v1775_v49 = vpop.eup %1774  ;;  %v1154_v55 = vmul.f32 1.442695, %v2423_v44 }
 0x4bd   : > { %v1152_v20 = vmul.f32 1.442695, %v2426_v46  ;;  %v1777_v57 = vpop.eup %1776  ;;  %v1111_v22 = vpop.xlane.xlu1 %1110  ;;  %v1169_v54 = vsel %vm1067_vm1, %v1775_v49, 0.0 }
 0x4be   : > { %v1109_v58 = vpop.xlane.xlu0 %1108  ;;  %1786 = vpow2.f32 %v1154_v55  ;;  %v2435_v56 = vsub.f32 %v2351_v60, %v1111_v22  ;;  %1190 = vadd.xlane.f32.xlu1 %v1169_v54  ;;  %v1168_v62 = vsel %vm1067_vm1, %v1777_v57, 0.0 }
 0x4bf   : > { %v2438_v51 = vsub.f32 %v2354_v63, %v1109_v58  ;;  %1788 = vpow2.f32 %v1152_v20  ;;  %1188 = vadd.xlane.f32.xlu0 %v1168_v62 }
 0x4c0   : > { %v1779_v29 = vpop.eup %1778  ;;  %v1158_v53 = vmul.f32 1.442695, %v2435_v56 }
 0x4c1   : > { %v1156_v33 = vmul.f32 1.442695, %v2438_v51  ;;  %v1781_v16 = vpop.eup %1780  ;;  %v1115_v0 = vpop.xlane.xlu1 %1114  ;;  %v1171_v60 = vsel %vm1067_vm1, %v1779_v29, 0.0 }
 0x4c2   : > { %v1113_v38 = vpop.xlane.xlu0 %1112  ;;  %1790 = vpow2.f32 %v1158_v53  ;;  %v2447_v63 = vsub.f32 %v2365_v3, %v1115_v0  ;;  %1194 = vadd.xlane.f32.xlu1 %v1171_v60  ;;  %v1170_v6 = vsel %vm1067_vm1, %v1781_v16, 0.0 }
 0x4c3   : > { %v2450_v41 = vsub.f32 %v2368_v5, %v1113_v38  ;;  %1792 = vpow2.f32 %v1156_v33  ;;  %1192 = vadd.xlane.f32.xlu0 %v1170_v6 }
 0x4c4   : > { %v1783_v9 = vpop.eup %1782  ;;  %v1162_v4 = vmul.f32 1.442695, %v2447_v63 }
 0x4c5   : > { %v1160_v12 = vmul.f32 1.442695, %v2450_v41  ;;  %v1785_v13 = vpop.eup %1784  ;;  %v1173_v14 = vsel %vm1067_vm1, %v1783_v9, 0.0 }
 0x4c6   : > { %1794 = vpow2.f32 %v1162_v4  ;;  %1198 = vadd.xlane.f32.xlu1 %v1173_v14  ;;  %v1172_v3 = vsel %vm1067_vm1, %v1785_v13, 0.0 }
 0x4c7   : > { %1796 = vpow2.f32 %v1160_v12  ;;  %1196 = vadd.xlane.f32.xlu0 %v1172_v3 }
 0x4c8   : > { %v1787_v5 = vpop.eup %1786 }
 0x4c9   : > { %v1789_v8 = vpop.eup %1788  ;;  %v1175_v30 = vsel %vm1067_vm1, %v1787_v5, 0.0 }
 0x4ca   : > { %1202 = vadd.xlane.f32.xlu1 %v1175_v30  ;;  %v1174_v10 = vsel %vm1067_vm1, %v1789_v8, 0.0 }
 0x4cb   : > { %1200 = vadd.xlane.f32.xlu0 %v1174_v10 }
 0x4cc   : > { %v1791_v18 = vpop.eup %1790 }
 0x4cd   : > { %v1793_v26 = vpop.eup %1792  ;;  %v1177_v21 = vsel %vm1067_vm1, %v1791_v18, 0.0 }
 0x4ce   : > { %1206 = vadd.xlane.f32.xlu1 %v1177_v21  ;;  %v1176_v17 = vsel %vm1067_vm1, %v1793_v26, 0.0 }
 0x4cf   : > { %1204 = vadd.xlane.f32.xlu0 %v1176_v17 }
 0x4d0   : > { %v1795_v23 = vpop.eup %1794 }
 0x4d1   : > { %v1797_v42 = vpop.eup %1796  ;;  %v1179_v1 = vsel %vm1067_vm1, %v1795_v23, 0.0 }
 0x4d2   : > { %1210 = vadd.xlane.f32.xlu1 %v1179_v1  ;;  %v1178_v25 = vsel %vm1067_vm1, %v1797_v42, 0.0 }
 0x4d3   : > { %1208 = vadd.xlane.f32.xlu0 %v1178_v25 }
 0x542   : > { %v1183_v28 = vpop.xlane.xlu1 %1182 }
 0x543   : > { %1798 = vlog2.f32 %v1183_v28  ;;  %v1181_v32 = vpop.xlane.xlu0 %1180 }
 0x544   : > { %1800 = vlog2.f32 %v1181_v32 }
 0x547   : > { %v1187_v35 = vpop.xlane.xlu1 %1186 }
 0x548   : > { %1802 = vlog2.f32 %v1187_v35  ;;  %v1185_v50 = vpop.xlane.xlu0 %1184 }
 0x549   : > { %1804 = vlog2.f32 %v1185_v50 }
 0x54b   : > { %v1191_v34 = vpop.xlane.xlu1 %1190 }
 0x54c   : > { %1806 = vlog2.f32 %v1191_v34  ;;  %v1189_v52 = vpop.xlane.xlu0 %1188 }
 0x54d   : > { %v1799_v39 = vpop.eup %1798  ;;  %1808 = vlog2.f32 %v1189_v52 }
 0x54e   : > { %v1801_v43 = vpop.eup %1800  ;;  %v1215_v2 = vmul.f32 0.6931472, %v1799_v39 }
 0x54f   : > { %v1213_v45 = vmul.f32 0.6931472, %v1801_v43  ;;  %v1195_v59 = vpop.xlane.xlu1 %1194 }
 0x550   : > { %v1245_v47 = vsub.f32 %v2377_v7, %v1215_v2  ;;  %1810 = vlog2.f32 %v1195_v59  ;;  %v1193_v61 = vpop.xlane.xlu0 %1192 }
 0x551   : > { %v1244_v48 = vsub.f32 %v2380_v11, %v1213_v45  ;;  %1812 = vlog2.f32 %v1193_v61 }
 0x552   : > { %v1803_v49 = vpop.eup %1802  ;;  %1261 = vst [vmem:[%s2477_s14 + $0x8] sm:$0xff] %v1245_v47 }
 0x553   : > { %v1805_v55 = vpop.eup %1804  ;;  %1260 = vst [vmem:[%s2477_s14] sm:$0xff] %v1244_v48  ;;  %v1219_v20 = vmul.f32 0.6931472, %v1803_v49  ;;  %v1199_v57 = vpop.xlane.xlu1 %1198 }
 0x554   : > { %v1217_v22 = vmul.f32 0.6931472, %v1805_v55  ;;  %1814 = vlog2.f32 %v1199_v57  ;;  %v1197_v7 = vpop.xlane.xlu0 %1196 }
 0x555   : > { %v1247_v58 = vsub.f32 %v2385_v15, %v1219_v20  ;;  %1816 = vlog2.f32 %v1197_v7 }
 0x556   : > { %v1807_v11 = vpop.eup %1806  ;;  %v1246_v54 = vsub.f32 %v2388_v31, %v1217_v22 }
 0x557   : > { %v1809_v62 = vpop.eup %1808  ;;  %1263 = vst [vmem:[%s2477_s14 + $0x18] sm:$0xff] %v1247_v58  ;;  %v1223_v29 = vmul.f32 0.6931472, %v1807_v11  ;;  %v1203_v53 = vpop.xlane.xlu1 %1202 }
 0x558   : > { %1262 = vst [vmem:[%s2477_s14 + $0x10] sm:$0xff] %v1246_v54  ;;  %v1221_v33 = vmul.f32 0.6931472, %v1809_v62  ;;  %1818 = vlog2.f32 %v1203_v53  ;;  %v1201_v16 = vpop.xlane.xlu0 %1200 }
 0x559   : > { %v1249_v0 = vsub.f32 %v2393_v24, %v1223_v29  ;;  %1820 = vlog2.f32 %v1201_v16 }
 0x55a   : > { %v1811_v38 = vpop.eup %1810  ;;  %v1248_v15 = vsub.f32 %v2396_v19, %v1221_v33 }
 0x55b   : > { %v1813_v60 = vpop.eup %1812  ;;  %1265 = vst [vmem:[%s2477_s14 + $0x28] sm:$0xff] %v1249_v0  ;;  %v1227_v31 = vmul.f32 0.6931472, %v1811_v38  ;;  %v1207_v6 = vpop.xlane.xlu1 %1206 }
 0x55c   : > { %1264 = vst [vmem:[%s2477_s14 + $0x20] sm:$0xff] %v1248_v15  ;;  %v1225_v9 = vmul.f32 0.6931472, %v1813_v60  ;;  %1822 = vlog2.f32 %v1207_v6  ;;  %v1205_v4 = vpop.xlane.xlu0 %1204 }
 0x55d   : > { %v1251_v12 = vsub.f32 %v2401_v40, %v1227_v31  ;;  %1824 = vlog2.f32 %v1205_v4 }
 0x55e   : > { %v1815_v13 = vpop.eup %1814  ;;  %v1250_v24 = vsub.f32 %v2404_v27, %v1225_v9 }
 0x55f   : > { %v1817_v14 = vpop.eup %1816  ;;  %1267 = vst [vmem:[%s2477_s14 + $0x38] sm:$0xff] %v1251_v12  ;;  %v1231_v19 = vmul.f32 0.6931472, %v1815_v13  ;;  %v1211_v3 = vpop.xlane.xlu1 %1210 }
 0x560   : > { %1266 = vst [vmem:[%s2477_s14 + $0x30] sm:$0xff] %v1250_v24  ;;  %v1229_v5 = vmul.f32 0.6931472, %v1817_v14  ;;  %1826 = vlog2.f32 %v1211_v3  ;;  %v1209_v8 = vpop.xlane.xlu0 %1208 }
 0x561   : > { %v1253_v30 = vsub.f32 %v2413_v36, %v1231_v19  ;;  %1828 = vlog2.f32 %v1209_v8 }
 0x562   : > { %v1819_v40 = vpop.eup %1818  ;;  %v1252_v10 = vsub.f32 %v2416_v37, %v1229_v5 }
 0x563   : > { %v1821_v18 = vpop.eup %1820  ;;  %1269 = vst [vmem:[%s2477_s14 + $0x48] sm:$0xff] %v1253_v30  ;;  %v1235_v27 = vmul.f32 0.6931472, %v1819_v40 }
 0x564   : > { %1268 = vst [vmem:[%s2477_s14 + $0x40] sm:$0xff] %v1252_v10  ;;  %v1233_v26 = vmul.f32 0.6931472, %v1821_v18 }
 0x565   : > { %v1255_v21 = vsub.f32 %v2423_v44, %v1235_v27 }
 0x566   : > { %v1823_v17 = vpop.eup %1822  ;;  %v1254_v23 = vsub.f32 %v2426_v46, %v1233_v26 }
 0x567   : > { %v1825_v42 = vpop.eup %1824  ;;  %1271 = vst [vmem:[%s2477_s14 + $0x58] sm:$0xff] %v1255_v21  ;;  %v1239_v36 = vmul.f32 0.6931472, %v1823_v17 }
 0x568   : > { %1270 = vst [vmem:[%s2477_s14 + $0x50] sm:$0xff] %v1254_v23  ;;  %v1237_v37 = vmul.f32 0.6931472, %v1825_v42 }
 0x569   : > { %v1257_v1 = vsub.f32 %v2435_v56, %v1239_v36 }
 0x56a   : > { %v1827_v25 = vpop.eup %1826  ;;  %v1256_v28 = vsub.f32 %v2438_v51, %v1237_v37 }
 0x56b   : > { %v1829_v44 = vpop.eup %1828  ;;  %1273 = vst [vmem:[%s2477_s14 + $0x68] sm:$0xff] %v1257_v1  ;;  %v1243_v32 = vmul.f32 0.6931472, %v1827_v25 }
 0x56c   : > { %1272 = vst [vmem:[%s2477_s14 + $0x60] sm:$0xff] %v1256_v28  ;;  %v1241_v46 = vmul.f32 0.6931472, %v1829_v44 }
 0x56d   : > { %v1259_v35 = vsub.f32 %v2447_v63, %v1243_v32 }
 0x56e   : > { %v1258_v56 = vsub.f32 %v2450_v41, %v1241_v46 }
 0x56f   : > { %1275 = vst [vmem:[%s2477_s14 + $0x78] sm:$0xff] %v1259_v35 }
 0x570   : > { %1274 = vst [vmem:[%s2477_s14 + $0x70] sm:$0xff] %v1258_v56 }
 0x571   : > { %1843 = shalt.err (!%p1840_p3)
}
 0x572   : > { %s1844_s9 = scalar_lea.hbm %s2511_s19, 2048  ;;  %s1848_s12 = scalar_lea.hbm %s2567_s6, 8192 }
 0x573   : > { %p1845_p4 = scmp.ne.s32.totalorder %s2511_s19, %s1844_s9  ;;  %p1849_p9 = scmp.lt.u32.totalorder %s2511_s19, %s2567_s6 }
 0x574   : > { %p1850_p10 = scmp.lt.u32.totalorder %s1848_s12, %s1844_s9  ;;  %p1852_p12 = scmp.lt.u32.totalorder %s1844_s9, %s2511_s19 }
 0x575   : > { %p1846_p7 = pnand %p1845_p4, %p1971_p5 }
 0x576   : > { %p1851_p11 = por %p1850_p10, %p1849_p9 }
 0x577   : > { %p1847_p8 = pneg %p1846_p7 }
 0x578   : > { %p1853_p13 = por %p1852_p12, %p1851_p11 }
 0x57a   : > { %p1854_p0 = pnand %p1853_p13, %p1847_p8 }
 0x57c   : > { %1857 = shalt.err (!%p1854_p0)
}
 0x57d   : > { %s1896_s15 = smov 128   ;;  %s1897_s17 = smov 8  }
 0x57e   : > { %1690 = dma.vmem_to_hbm [thread:$0]  (%p1971_p5), %s2513_s16, 2048, %s2511_s19, %s2520_s25, %s1896_s15, %s1896_s15, %s1897_s17  }
 0x57f PF: > { %p1696_p1 = scmp.ge.s32.totalorder %s1892_s24, 2  ;;  %s1305_s18 = sand.u32 1, %s1880_s21  }
 0x580   : > { %s1306_s20 = scalar_lea.sflag [#allocation3], %s1305_s18 }
 0x581   : > { %p1693_p2 = pnand %p1696_p1, %p1975_p6 }
 0x583   : > { %1875 = dma.done.wait (!%p1693_p2), %s1306_s20, 2048  }
 0x584   : > { %1877 = vsyncadd (!%p1693_p2), %s1306_s20, 4294965248  ;;  %p16_p3 = scmp.ge.s32.totalorder %s1958_s27, 6   ;;  %s2570_s21 = smov %s1884_s22 }
 0x585   : > { %s2571_s22 = smov %s1888_s23  ;;  %s2572_s23 = smov %s1969_s30 }
 0x586   : > { %s2573_s24 = smov %s1958_s27  ;;  %18 = sbr.rel (!%p16_p3) target bundleno = 3 (0x3), region = 82 }
 0x58d   :  { %1311 = vsyncpa [#allocation3], 1 }
 0x58e   :  { %1313 = vsyncpa [#allocation3 + $0x1], 1 }

</bundles_post_ra>
